<compile_context>
chip_gen: v6e
topology: v6e:2x2x1
jax: 0.10.0
libtpu: 0.0.40
codegen_flags: <defaults>
</compile_context>

<pallas_src>
import jax
import jax.numpy as jnp
from jax.experimental import pallas as pl
from jax.experimental.pallas import tpu as pltpu

_EPS = 1e-5  # nn.LayerNorm default eps


def _round_up(n, m):
    return ((n + m - 1) // m) * m


def _layernorm_no_affine(h):
    # Two-pass (mean, then E[(x-mu)^2]) -- same numerics as PyTorch LayerNorm.
    mu = jnp.mean(h, axis=-1, keepdims=True)
    d = h - mu
    var = jnp.mean(d * d, axis=-1, keepdims=True)
    return d * jax.lax.rsqrt(var + _EPS)


def mlp_kernel(x_ref,
               w1_ref, bi1_ref, g1_ref, be1_ref,
               w2_ref, bi2_ref, g2_ref, be2_ref,
               w3_ref, bi3_ref,
               o_ref):
    # Hoist the small per-feature vectors once per grid step.
    bi1 = bi1_ref[...]
    g1 = g1_ref[...]
    be1 = be1_ref[...]
    bi2 = bi2_ref[...]
    g2 = g2_ref[...]
    be2 = be2_ref[...]
    bi3 = bi3_ref[...]

    x = x_ref[...].astype(jnp.float32)

    # norm_input (affine folded into fc1 at prepare time) -> fc1
    h = _layernorm_no_affine(x)
    h = jnp.dot(h.astype(w1_ref.dtype), w1_ref[...],
                preferred_element_type=jnp.float32) + bi1

    # norm1 + relu (+ dropout = identity in eval) -> fc2
    h = _layernorm_no_affine(h) * g1 + be1
    h = jnp.maximum(h, 0.0)
    h = jnp.dot(h.astype(w2_ref.dtype), w2_ref[...],
                preferred_element_type=jnp.float32) + bi2

    # norm2 + relu (+ dropout = identity in eval) -> fc3 (unpadded logits)
    h = _layernorm_no_affine(h) * g2 + be2
    h = jnp.maximum(h, 0.0)
    h = jnp.dot(h.astype(w3_ref.dtype), w3_ref[...],
                preferred_element_type=jnp.float32) + bi3

    o_ref[...] = h.astype(o_ref.dtype)


def prepare_params(params, *, use_bf16=False):
    """One-time parameter preprocessing. Call once, outside the per-step path.

    Folds the input-LayerNorm affine into fc1:
        (ln(x)*g0 + b0) @ W1 + b1 == ln(x) @ (g0[:,None] * W1) + (b0 @ W1 + b1)
    Optionally casts the (tiny, VMEM-resident) weight matrices to bf16; the
    activations / LayerNorm math / accumulation stay f32 in the kernel.
    """
    g0 = params["g0"].reshape(-1)
    b0 = params["b0"].reshape(1, -1)
    w1f = params["w1"] * g0[:, None]
    bi1f = params["bi1"] + b0 @ params["w1"]
    w2 = params["w2"]
    w3 = params["w3"]
    if use_bf16:
        w1f = w1f.astype(jnp.bfloat16)
        w2 = w2.astype(jnp.bfloat16)
        w3 = w3.astype(jnp.bfloat16)
    return (w1f, bi1f, params["g1"], params["be1"],
            w2, params["bi2"], params["g2"], params["be2"],
            w3, params["bi3"])


def layernorm_classifier_forward(x, prepared, *, training=False,
                                 block_batch=4096):
    """x: [B, in_features]. prepared: output of prepare_params()."""
    assert not training, "TODO(synk): training-mode dropout not implemented"

    B, in_features = x.shape
    num_classes = prepared[8].shape[1]

    # ---- batch tiling -------------------------------------------------------
    # Sublane alignment: 16 rows if x arrives in bf16 (packed layout), else 8.
    sublane = 16 if x.dtype == jnp.bfloat16 else 8
    B_su = _round_up(B, sublane)
    TB = _round_up(min(block_batch, B_su), sublane)
    # For large batches guarantee >=2 grid steps so v7x megacore has work to
    # shard; for small batches a single step avoids pointless overhead.
    if B_su >= 1024 and TB * 2 > B_su:
        TB = _round_up((B_su + 1) // 2, sublane)
    B_pad = _round_up(B, TB)
    if B_pad != B:
        x = jnp.pad(x, ((0, B_pad - B), (0, 0)))

    args = (x,) + tuple(prepared)

    def _const_spec(a):
        # Full-array block, same block every grid step -> stays VMEM-resident.
        return pl.BlockSpec(a.shape, lambda i: (0,) * a.ndim)

    in_specs = [pl.BlockSpec((TB, in_features), lambda i: (i, 0))]
    in_specs += [_const_spec(a) for a in prepared]
    # Unpadded logits: last block dim == full array dim (legal); masked vst on
    # 10 lanes is cheap vs the 12.8x HBM writeback saved by not padding to 128.
    out_spec = pl.BlockSpec((TB, num_classes), lambda i: (i, 0))

    out = pl.pallas_call(
        mlp_kernel,
        out_shape=jax.ShapeDtypeStruct((B_pad, num_classes), jnp.float32),
        grid=(B_pad // TB,),
        in_specs=in_specs,
        out_specs=out_spec,
        compiler_params=pltpu.CompilerParams(
            dimension_semantics=("parallel",),
            # Above the 16/32 MiB scoped defaults, below v7x's 64 MiB physical.
            # At TB=4096 the kernel needs only ~8 MiB (double-buffered x/out
            # tiles + f32 intermediates of ~3 KiB/row).
            vmem_limit_bytes=48 * 1024 * 1024,
        ),
    )(*args)

    return out[:B] if B_pad != B else out


def init_params(key, in_features, num_classes, is_local=False):
    hidden1 = 128 if not is_local else 96
    hidden2 = 64 if not is_local else 48
    k1, k2, k3 = jax.random.split(key, 3)

    # kaiming_normal_ (fan_in, relu gain): std = sqrt(2 / fan_in)
    w1 = jax.random.normal(k1, (in_features, hidden1), jnp.float32) * jnp.sqrt(2.0 / in_features)
    w2 = jax.random.normal(k2, (hidden1, hidden2), jnp.float32) * jnp.sqrt(2.0 / hidden1)
    # xavier_normal_: std = sqrt(2 / (fan_in + fan_out))
    w3 = jax.random.normal(k3, (hidden2, num_classes), jnp.float32) * jnp.sqrt(2.0 / (hidden2 + num_classes))

    def ones(n):
        return jnp.ones((1, n), jnp.float32)

    def zeros(n):
        return jnp.zeros((1, n), jnp.float32)

    return {
        # LayerNorm affine params (gamma=1, beta=0, PyTorch default init)
        "g0": ones(in_features), "b0": zeros(in_features),
        "g1": ones(hidden1), "be1": zeros(hidden1),
        "g2": ones(hidden2), "be2": zeros(hidden2),
        # Linear weights ([in, out], i.e. PyTorch weight transposed) + zero biases
        "w1": w1, "bi1": zeros(hidden1),
        "w2": w2, "bi2": zeros(hidden2),
        "w3": w3, "bi3": zeros(num_classes),
    }


def _reference(x, p):
    def ln(h, g, b):
        mu = jnp.mean(h, axis=-1, keepdims=True)
        var = jnp.mean((h - mu) ** 2, axis=-1, keepdims=True)
        return (h - mu) * jax.lax.rsqrt(var + _EPS) * g + b

    h = ln(x, p["g0"], p["b0"])
    h = jnp.maximum(ln(h @ p["w1"] + p["bi1"], p["g1"], p["be1"]), 0.0)
    h = jnp.maximum(ln(h @ p["w2"] + p["bi2"], p["g2"], p["be2"]), 0.0)
    return h @ p["w3"] + p["bi3"]


if __name__ == "__main__":
    key = jax.random.PRNGKey(0)
    kx, kp, ka, kb = jax.random.split(key, 4)

    batch, in_features, num_classes = 8, 32, 10
    x = jax.random.normal(kx, (batch, in_features), jnp.float32)
    params = init_params(kp, in_features, num_classes, is_local=False)

    # Perturb the input-LayerNorm affine params so the prepare-time folding
    # of (g0, b0) into fc1 is actually exercised (not just identity).
    params["g0"] = params["g0"] + 0.1 * jax.random.normal(ka, params["g0"].shape, jnp.float32)
    params["b0"] = params["b0"] + 0.1 * jax.random.normal(kb, params["b0"].shape, jnp.float32)

    # One-time preprocessing (outside the serving loop).
    prepared = prepare_params(params)

    out = layernorm_classifier_forward(x, prepared)
    out = jax.block_until_ready(out)

    ref = _reference(x, params)
    assert out.shape == (batch, num_classes)
    assert jnp.allclose(out, ref, atol=1e-4, rtol=1e-4), "mismatch vs reference"

    print("KERNEL_OK")
</pallas_src>

<mosaic_0001>
module attributes {stable_mosaic.version = 11 : i64} {
  func.func @mlp_kernel(%arg0: i32, %arg1: memref<8x32xf32, #tpu.memory_space<vmem>>, %arg2: memref<32x128xf32, #tpu.memory_space<vmem>>, %arg3: memref<1x128xf32, #tpu.memory_space<vmem>>, %arg4: memref<1x128xf32, #tpu.memory_space<vmem>>, %arg5: memref<1x128xf32, #tpu.memory_space<vmem>>, %arg6: memref<128x64xf32, #tpu.memory_space<vmem>>, %arg7: memref<1x64xf32, #tpu.memory_space<vmem>>, %arg8: memref<1x64xf32, #tpu.memory_space<vmem>>, %arg9: memref<1x64xf32, #tpu.memory_space<vmem>>, %arg10: memref<64x10xf32, #tpu.memory_space<vmem>>, %arg11: memref<1x10xf32, #tpu.memory_space<vmem>>, %arg12: memref<8x10xf32, #tpu.memory_space<vmem>>) attributes {dimension_semantics = [#tpu.dimension_semantics<parallel>], iteration_bounds = array<i64: 1>, scalar_prefetch = 0 : i64, scratch_operands = 0 : i64, tpu.core_type = #tpu.core_type<tc>, window_params = [{transform_indices = @transform_0, window_bounds = array<i64: 8, 32>}, {pipeline_mode = #tpu.pipeline_mode<synchronous>, transform_indices = @transform_1, window_bounds = array<i64: 32, 128>}, {pipeline_mode = #tpu.pipeline_mode<synchronous>, transform_indices = @transform_2, window_bounds = array<i64: 1, 128>}, {pipeline_mode = #tpu.pipeline_mode<synchronous>, transform_indices = @transform_3, window_bounds = array<i64: 1, 128>}, {pipeline_mode = #tpu.pipeline_mode<synchronous>, transform_indices = @transform_4, window_bounds = array<i64: 1, 128>}, {pipeline_mode = #tpu.pipeline_mode<synchronous>, transform_indices = @transform_5, window_bounds = array<i64: 128, 64>}, {pipeline_mode = #tpu.pipeline_mode<synchronous>, transform_indices = @transform_6, window_bounds = array<i64: 1, 64>}, {pipeline_mode = #tpu.pipeline_mode<synchronous>, transform_indices = @transform_7, window_bounds = array<i64: 1, 64>}, {pipeline_mode = #tpu.pipeline_mode<synchronous>, transform_indices = @transform_8, window_bounds = array<i64: 1, 64>}, {pipeline_mode = #tpu.pipeline_mode<synchronous>, transform_indices = @transform_9, window_bounds = array<i64: 64, 10>}, {pipeline_mode = #tpu.pipeline_mode<synchronous>, transform_indices = @transform_10, window_bounds = array<i64: 1, 10>}, {transform_indices = @transform_11, window_bounds = array<i64: 8, 10>}]} {
    %c0 = arith.constant 0 : index
    %c0_0 = arith.constant 0 : index
    %0 = vector.load %arg3[%c0, %c0_0] : memref<1x128xf32, #tpu.memory_space<vmem>>, vector<1x128xf32>
    %c0_1 = arith.constant 0 : index
    %c0_2 = arith.constant 0 : index
    %1 = vector.load %arg4[%c0_1, %c0_2] : memref<1x128xf32, #tpu.memory_space<vmem>>, vector<1x128xf32>
    %c0_3 = arith.constant 0 : index
    %c0_4 = arith.constant 0 : index
    %2 = vector.load %arg5[%c0_3, %c0_4] : memref<1x128xf32, #tpu.memory_space<vmem>>, vector<1x128xf32>
    %c0_5 = arith.constant 0 : index
    %c0_6 = arith.constant 0 : index
    %3 = vector.load %arg7[%c0_5, %c0_6] : memref<1x64xf32, #tpu.memory_space<vmem>>, vector<1x64xf32>
    %c0_7 = arith.constant 0 : index
    %c0_8 = arith.constant 0 : index
    %4 = vector.load %arg8[%c0_7, %c0_8] : memref<1x64xf32, #tpu.memory_space<vmem>>, vector<1x64xf32>
    %c0_9 = arith.constant 0 : index
    %c0_10 = arith.constant 0 : index
    %5 = vector.load %arg9[%c0_9, %c0_10] : memref<1x64xf32, #tpu.memory_space<vmem>>, vector<1x64xf32>
    %c0_11 = arith.constant 0 : index
    %c0_12 = arith.constant 0 : index
    %6 = vector.load %arg11[%c0_11, %c0_12] : memref<1x10xf32, #tpu.memory_space<vmem>>, vector<1x10xf32>
    %c0_13 = arith.constant 0 : index
    %c0_14 = arith.constant 0 : index
    %7 = vector.load %arg1[%c0_13, %c0_14] : memref<8x32xf32, #tpu.memory_space<vmem>>, vector<8x32xf32>
    %cst = arith.constant dense<0.000000e+00> : vector<8xf32>
    %8 = vector.multi_reduction <add>, %7, %cst [1] : vector<8x32xf32> to vector<8xf32>
    %9 = vector.shape_cast %8 : vector<8xf32> to vector<8x1xf32>
    %cst_15 = arith.constant 3.200000e+01 : f32
    %10 = vector.broadcast %cst_15 : f32 to vector<8x1xf32>
    %11 = arith.divf %9, %10 : vector<8x1xf32>
    %12 = vector.broadcast %11 : vector<8x1xf32> to vector<8x32xf32>
    %13 = arith.subf %7, %12 : vector<8x32xf32>
    %14 = arith.mulf %13, %13 : vector<8x32xf32>
    %cst_16 = arith.constant dense<0.000000e+00> : vector<8xf32>
    %15 = vector.multi_reduction <add>, %14, %cst_16 [1] : vector<8x32xf32> to vector<8xf32>
    %16 = vector.shape_cast %15 : vector<8xf32> to vector<8x1xf32>
    %cst_17 = arith.constant 3.200000e+01 : f32
    %17 = vector.broadcast %cst_17 : f32 to vector<8x1xf32>
    %18 = arith.divf %16, %17 : vector<8x1xf32>
    %cst_18 = arith.constant 9.99999974E-6 : f32
    %19 = vector.broadcast %cst_18 : f32 to vector<8x1xf32>
    %20 = arith.addf %18, %19 : vector<8x1xf32>
    %21 = math.rsqrt %20 : vector<8x1xf32>
    %22 = vector.broadcast %21 : vector<8x1xf32> to vector<8x32xf32>
    %23 = arith.mulf %13, %22 : vector<8x32xf32>
    %c0_19 = arith.constant 0 : index
    %c0_20 = arith.constant 0 : index
    %24 = vector.load %arg2[%c0_19, %c0_20] : memref<32x128xf32, #tpu.memory_space<vmem>>, vector<32x128xf32>
    %cst_21 = arith.constant dense<0.000000e+00> : vector<8x128xf32>
    %25 = tpu.matmul %23, %24, %cst_21 {dimension_numbers = #tpu.dot_dimension_numbers<[1], [0], [0], [1], [0, 0, 1, 1], [], []>} : vector<8x32xf32>, vector<32x128xf32>, vector<8x128xf32> -> vector<8x128xf32>
    %26 = vector.broadcast %0 : vector<1x128xf32> to vector<8x128xf32>
    %27 = arith.addf %25, %26 : vector<8x128xf32>
    %cst_22 = arith.constant dense<0.000000e+00> : vector<8xf32>
    %28 = vector.multi_reduction <add>, %27, %cst_22 [1] : vector<8x128xf32> to vector<8xf32>
    %29 = vector.shape_cast %28 : vector<8xf32> to vector<8x1xf32>
    %cst_23 = arith.constant 1.280000e+02 : f32
    %30 = vector.broadcast %cst_23 : f32 to vector<8x1xf32>
    %31 = arith.divf %29, %30 : vector<8x1xf32>
    %32 = vector.broadcast %31 : vector<8x1xf32> to vector<8x128xf32>
    %33 = arith.subf %27, %32 : vector<8x128xf32>
    %34 = arith.mulf %33, %33 : vector<8x128xf32>
    %cst_24 = arith.constant dense<0.000000e+00> : vector<8xf32>
    %35 = vector.multi_reduction <add>, %34, %cst_24 [1] : vector<8x128xf32> to vector<8xf32>
    %36 = vector.shape_cast %35 : vector<8xf32> to vector<8x1xf32>
    %cst_25 = arith.constant 1.280000e+02 : f32
    %37 = vector.broadcast %cst_25 : f32 to vector<8x1xf32>
    %38 = arith.divf %36, %37 : vector<8x1xf32>
    %cst_26 = arith.constant 9.99999974E-6 : f32
    %39 = vector.broadcast %cst_26 : f32 to vector<8x1xf32>
    %40 = arith.addf %38, %39 : vector<8x1xf32>
    %41 = math.rsqrt %40 : vector<8x1xf32>
    %42 = vector.broadcast %41 : vector<8x1xf32> to vector<8x128xf32>
    %43 = arith.mulf %33, %42 : vector<8x128xf32>
    %44 = vector.broadcast %1 : vector<1x128xf32> to vector<8x128xf32>
    %45 = arith.mulf %43, %44 : vector<8x128xf32>
    %46 = vector.broadcast %2 : vector<1x128xf32> to vector<8x128xf32>
    %47 = arith.addf %45, %46 : vector<8x128xf32>
    %cst_27 = arith.constant 0.000000e+00 : f32
    %48 = vector.broadcast %cst_27 : f32 to vector<8x128xf32>
    %49 = arith.maximumf %47, %48 : vector<8x128xf32>
    %c0_28 = arith.constant 0 : index
    %c0_29 = arith.constant 0 : index
    %50 = vector.load %arg6[%c0_28, %c0_29] : memref<128x64xf32, #tpu.memory_space<vmem>>, vector<128x64xf32>
    %cst_30 = arith.constant dense<0.000000e+00> : vector<8x64xf32>
    %51 = tpu.matmul %49, %50, %cst_30 {dimension_numbers = #tpu.dot_dimension_numbers<[1], [0], [0], [1], [0, 0, 1, 1], [], []>} : vector<8x128xf32>, vector<128x64xf32>, vector<8x64xf32> -> vector<8x64xf32>
    %52 = vector.broadcast %3 : vector<1x64xf32> to vector<8x64xf32>
    %53 = arith.addf %51, %52 : vector<8x64xf32>
    %cst_31 = arith.constant dense<0.000000e+00> : vector<8xf32>
    %54 = vector.multi_reduction <add>, %53, %cst_31 [1] : vector<8x64xf32> to vector<8xf32>
    %55 = vector.shape_cast %54 : vector<8xf32> to vector<8x1xf32>
    %cst_32 = arith.constant 6.400000e+01 : f32
    %56 = vector.broadcast %cst_32 : f32 to vector<8x1xf32>
    %57 = arith.divf %55, %56 : vector<8x1xf32>
    %58 = vector.broadcast %57 : vector<8x1xf32> to vector<8x64xf32>
    %59 = arith.subf %53, %58 : vector<8x64xf32>
    %60 = arith.mulf %59, %59 : vector<8x64xf32>
    %cst_33 = arith.constant dense<0.000000e+00> : vector<8xf32>
    %61 = vector.multi_reduction <add>, %60, %cst_33 [1] : vector<8x64xf32> to vector<8xf32>
    %62 = vector.shape_cast %61 : vector<8xf32> to vector<8x1xf32>
    %cst_34 = arith.constant 6.400000e+01 : f32
    %63 = vector.broadcast %cst_34 : f32 to vector<8x1xf32>
    %64 = arith.divf %62, %63 : vector<8x1xf32>
    %cst_35 = arith.constant 9.99999974E-6 : f32
    %65 = vector.broadcast %cst_35 : f32 to vector<8x1xf32>
    %66 = arith.addf %64, %65 : vector<8x1xf32>
    %67 = math.rsqrt %66 : vector<8x1xf32>
    %68 = vector.broadcast %67 : vector<8x1xf32> to vector<8x64xf32>
    %69 = arith.mulf %59, %68 : vector<8x64xf32>
    %70 = vector.broadcast %4 : vector<1x64xf32> to vector<8x64xf32>
    %71 = arith.mulf %69, %70 : vector<8x64xf32>
    %72 = vector.broadcast %5 : vector<1x64xf32> to vector<8x64xf32>
    %73 = arith.addf %71, %72 : vector<8x64xf32>
    %cst_36 = arith.constant 0.000000e+00 : f32
    %74 = vector.broadcast %cst_36 : f32 to vector<8x64xf32>
    %75 = arith.maximumf %73, %74 : vector<8x64xf32>
    %c0_37 = arith.constant 0 : index
    %c0_38 = arith.constant 0 : index
    %76 = vector.load %arg10[%c0_37, %c0_38] : memref<64x10xf32, #tpu.memory_space<vmem>>, vector<64x10xf32>
    %cst_39 = arith.constant dense<0.000000e+00> : vector<8x10xf32>
    %77 = tpu.matmul %75, %76, %cst_39 {dimension_numbers = #tpu.dot_dimension_numbers<[1], [0], [0], [1], [0, 0, 1, 1], [], []>} : vector<8x64xf32>, vector<64x10xf32>, vector<8x10xf32> -> vector<8x10xf32>
    %78 = vector.broadcast %6 : vector<1x10xf32> to vector<8x10xf32>
    %79 = arith.addf %77, %78 : vector<8x10xf32>
    %c0_40 = arith.constant 0 : index
    %c0_41 = arith.constant 0 : index
    %80 = vector.load %arg12[%c0_40, %c0_41] : memref<8x10xf32, #tpu.memory_space<vmem>>, vector<8x10xf32>
    tpu.vector_store %arg12[%c0_40, %c0_41], %79 {strides = array<i32>} : memref<8x10xf32, #tpu.memory_space<vmem>>, vector<8x10xf32>,
    return
  }
  func.func @transform_0(%arg0: i32) -> (i32, i32) {
    %c0_i32 = arith.constant 0 : i32
    %c0_i32_0 = arith.constant 0 : i32
    return %arg0, %c0_i32 : i32, i32
  }
  func.func @transform_1(%arg0: i32) -> (i32, i32) {
    %c0_i32 = arith.constant 0 : i32
    %c0_i32_0 = arith.constant 0 : i32
    %c0_i32_1 = arith.constant 0 : i32
    return %c0_i32, %c0_i32_0 : i32, i32
  }
  func.func @transform_2(%arg0: i32) -> (i32, i32) {
    %c0_i32 = arith.constant 0 : i32
    %c0_i32_0 = arith.constant 0 : i32
    %c0_i32_1 = arith.constant 0 : i32
    return %c0_i32, %c0_i32_0 : i32, i32
  }
  func.func @transform_3(%arg0: i32) -> (i32, i32) {
    %c0_i32 = arith.constant 0 : i32
    %c0_i32_0 = arith.constant 0 : i32
    %c0_i32_1 = arith.constant 0 : i32
    return %c0_i32, %c0_i32_0 : i32, i32
  }
  func.func @transform_4(%arg0: i32) -> (i32, i32) {
    %c0_i32 = arith.constant 0 : i32
    %c0_i32_0 = arith.constant 0 : i32
    %c0_i32_1 = arith.constant 0 : i32
    return %c0_i32, %c0_i32_0 : i32, i32
  }
  func.func @transform_5(%arg0: i32) -> (i32, i32) {
    %c0_i32 = arith.constant 0 : i32
    %c0_i32_0 = arith.constant 0 : i32
    %c0_i32_1 = arith.constant 0 : i32
    return %c0_i32, %c0_i32_0 : i32, i32
  }
  func.func @transform_6(%arg0: i32) -> (i32, i32) {
    %c0_i32 = arith.constant 0 : i32
    %c0_i32_0 = arith.constant 0 : i32
    %c0_i32_1 = arith.constant 0 : i32
    return %c0_i32, %c0_i32_0 : i32, i32
  }
  func.func @transform_7(%arg0: i32) -> (i32, i32) {
    %c0_i32 = arith.constant 0 : i32
    %c0_i32_0 = arith.constant 0 : i32
    %c0_i32_1 = arith.constant 0 : i32
    return %c0_i32, %c0_i32_0 : i32, i32
  }
  func.func @transform_8(%arg0: i32) -> (i32, i32) {
    %c0_i32 = arith.constant 0 : i32
    %c0_i32_0 = arith.constant 0 : i32
    %c0_i32_1 = arith.constant 0 : i32
    return %c0_i32, %c0_i32_0 : i32, i32
  }
  func.func @transform_9(%arg0: i32) -> (i32, i32) {
    %c0_i32 = arith.constant 0 : i32
    %c0_i32_0 = arith.constant 0 : i32
    %c0_i32_1 = arith.constant 0 : i32
    return %c0_i32, %c0_i32_0 : i32, i32
  }
  func.func @transform_10(%arg0: i32) -> (i32, i32) {
    %c0_i32 = arith.constant 0 : i32
    %c0_i32_0 = arith.constant 0 : i32
    %c0_i32_1 = arith.constant 0 : i32
    return %c0_i32, %c0_i32_0 : i32, i32
  }
  func.func @transform_11(%arg0: i32) -> (i32, i32) {
    %c0_i32 = arith.constant 0 : i32
    %c0_i32_0 = arith.constant 0 : i32
    return %arg0, %c0_i32 : i32, i32
  }
}

</mosaic_0001>

<bundles_post_ra>
// kernel: tpu_custom_call.1
= control target key start
LH: loop header
LB: loop body
LE: loop exit
PB: predicated region body
PF: predicated region fallthrough
CT: control target
= control target key end

     0   :  { %vm47_vm0 = vcmask 261120   ;;  %s747_s0 = inlined_call_operand.vmem [shape: f32[8,32], index: 0, kind: input, shape index: {}]   ;;  %s748_s1 = inlined_call_operand.vmem [shape: f32[32,128], index: 1, kind: input, shape index: {}]   ;;  %s749_s2 = inlined_call_operand.vmem [shape: f32[1,128], index: 2, kind: input, shape index: {}]   ;;  %s750_s3 = inlined_call_operand.vmem [shape: f32[1,128], index: 3, kind: input, shape index: {}]   ;;  %s751_s4 = inlined_call_operand.vmem [shape: f32[1,128], index: 4, kind: input, shape index: {}]   ;;  %s752_s5 = inlined_call_operand.vmem [shape: f32[128,64], index: 5, kind: input, shape index: {}]   ;;  %s753_s6 = inlined_call_operand.vmem [shape: f32[1,64], index: 6, kind: input, shape index: {}]   ;;  %s754_s7 = inlined_call_operand.vmem [shape: f32[1,64], index: 7, kind: input, shape index: {}]   ;;  %s755_s8 = inlined_call_operand.vmem [shape: f32[1,64], index: 8, kind: input, shape index: {}]   ;;  %s756_s9 = inlined_call_operand.vmem [shape: f32[64,10], index: 9, kind: input, shape index: {}]   ;;  %s757_s10 = inlined_call_operand.vmem [shape: f32[1,10], index: 10, kind: input, shape index: {}]   ;;  %s758_s11 = inlined_call_operand.hbm [shape: f32[8,10], index: 11, kind: output, shape index: {}]  }
   0x1   :  { %v46_v0 = vld [vmem:[%s747_s0] sm:$0xff] }
   0x2   :  { %16 = vsyncpa [#allocation3], 0  ;;  %v48_v1 = vsel %vm47_vm0, %v46_v0, 0.0  ;;  %v65_v7 = vld [vmem:[%s748_s1 + $0x18] sm:$0xff]  ;;  %v533_v8 = vmov 0.0   ;;  %v64_v9 = vld [vmem:[%s748_s1 + $0x10] sm:$0xff] }
   0x3   :  { %49 = vadd.xlane.f32.xlu0 %v48_v1  ;;  %437 = vmatprep.subr.mxu0 %v533_v8  ;;  %vm534_vm1 = vmmov 0   ;;  %v63_v10 = vld [vmem:[%s748_s1 + $0x8] sm:$0xff]  ;;  %v62_v11 = vld [vmem:[%s748_s1] sm:$0xff]  ;;  %v187_v21 = vld [vmem:[%s752_s5 + $0x78] sm:$0xff]  ;;  %vm264_vm2 = vcmask 523264   ;;  %s535_s18 = smov [#allocation2]  }
   0x4   :  { %445 = vmatprep.mubr.msk.f32.mxu0 %vm534_vm1, %v533_v8  ;;  %438 = vmatpush3.msra.mxu0 %v65_v7  ;;  %v397_v17 = vld [vmem:[%s749_s2] ss:$0 sm:$0xff]  ;;  %v186_v22 = vld [vmem:[%s752_s5 + $0x70] sm:$0xff]  ;;  %v185_v23 = vld [vmem:[%s752_s5 + $0x68] sm:$0xff]  ;;  %s389_s19 = sshll.u32 %s535_s18, 4  ;;  %vm381_vm3 = vcmask 80896   ;;  %s390_s19 = int_to_ptr.vmem [resolvable:$true] %s389_s19 }
   0x5   :  { %448 = vmatprep.subr.mxu1 %v533_v8  ;;  %439 = vmatprep.subr.mxu0 %v533_v8  ;;  %v184_v28 = vld [vmem:[%s752_s5 + $0x60] sm:$0xff]  ;;  %v183_v29 = vld [vmem:[%s752_s5 + $0x58] sm:$0xff]  ;;  %v182_v30 = vld [vmem:[%s752_s5 + $0x50] sm:$0xff]  ;;  %p516_p1 = scmp.lt.s32.totalorder %s390_s19, %s390_s19 }
   0x6   :  { %480 = vmatprep.mubr.msk.f32.mxu1 %vm534_vm1, %v533_v8  ;;  %440 = vmatpush3.msra.mxu0 %v64_v9  ;;  %v181_v31 = vld [vmem:[%s752_s5 + $0x48] sm:$0xff]  ;;  %v180_v32 = vld [vmem:[%s752_s5 + $0x40] sm:$0xff]  ;;  %v179_v33 = vld [vmem:[%s752_s5 + $0x38] sm:$0xff] }
   0x7   :  { %441 = vmatprep.subr.mxu0 %v533_v8  ;;  %449 = vmatpush3.msra.mxu1 %v187_v21  ;;  %v178_v34 = vld [vmem:[%s752_s5 + $0x30] sm:$0xff]  ;;  %v177_v35 = vld [vmem:[%s752_s5 + $0x28] sm:$0xff]  ;;  %v176_v36 = vld [vmem:[%s752_s5 + $0x20] sm:$0xff] }
   0x8   :  { %442 = vmatpush3.msra.mxu0 %v63_v10  ;;  %450 = vmatprep.subr.mxu1 %v533_v8  ;;  %v175_v37 = vld [vmem:[%s752_s5 + $0x18] sm:$0xff]  ;;  %v174_v38 = vld [vmem:[%s752_s5 + $0x10] sm:$0xff]  ;;  %v173_v39 = vld [vmem:[%s752_s5 + $0x8] sm:$0xff] }
   0x9   :  { %443 = vmatprep.subr.mxu0 %v533_v8  ;;  %451 = vmatpush3.msra.mxu1 %v186_v22  ;;  %v172_v40 = vld [vmem:[%s752_s5] sm:$0xff]  ;;  %v301_v61 = vld [vmem:[%s756_s9 + $0x38] sm:$0xff]  ;;  %v300_v62 = vld [vmem:[%s756_s9 + $0x30] sm:$0xff] }
   0xa   :  { %444 = vmatpush3.msra.mxu0 %v62_v11  ;;  %452 = vmatprep.subr.mxu1 %v533_v8  ;;  %v399_v45 = vld [vmem:[%s750_s3] ss:$0 sm:$0xff]  ;;  %v299_v63 = vld [vmem:[%s756_s9 + $0x28] sm:$0xff]  ;;  %v297_v1 = vld [vmem:[%s756_s9 + $0x18] sm:$0xff] }
   0xb   :  { %483 = vmatprep.subr.mxu0 %v533_v8  ;;  %453 = vmatpush3.msra.mxu1 %v185_v23  ;;  %v400_v47 = vld [vmem:[%s751_s4] ss:$0 sm:$0xff] }
   0xc   :  { %454 = vmatprep.subr.mxu1 %v533_v8  ;;  %v401_v51 = vld [vmem:[%s753_s6] ss:$0 sm:$0xff] }
   0xd   :  { %455 = vmatpush3.msra.mxu1 %v184_v28  ;;  %v402_v10 = vld [vmem:[%s754_s7] ss:$0 sm:$0xff]  ;;  %s511_s7 = scalar_lea.vmem %s390_s19, 128 }
   0xe   :  { %456 = vmatprep.subr.mxu1 %v533_v8  ;;  %p512_p0 = scmp.ne.s32.totalorder %s390_s19, %s511_s7  ;;  %p517_p2 = scmp.lt.s32.totalorder %s511_s7, %s511_s7 }
   0xf   :  { %457 = vmatpush3.msra.mxu1 %v183_v29 }
  0x10   :  { %458 = vmatprep.subr.mxu1 %v533_v8  ;;  %p518_p3 = por %p517_p2, %p516_p1 }
  0x11   :  { %459 = vmatpush3.msra.mxu1 %v182_v30 }
  0x12   :  { %460 = vmatprep.subr.mxu1 %v533_v8  ;;  %p519_p4 = pnand %p518_p3, %p512_p0 }
  0x13   :  { %461 = vmatpush3.msra.mxu1 %v181_v31 }
  0x14   :  { %462 = vmatprep.subr.mxu1 %v533_v8 }
  0x15   :  { %463 = vmatpush3.msra.mxu1 %v180_v32 }
  0x16   :  { %464 = vmatprep.subr.mxu1 %v533_v8 }
  0x17   :  { %465 = vmatpush3.msra.mxu1 %v179_v33 }
  0x18   :  { %466 = vmatprep.subr.mxu1 %v533_v8 }
  0x19   :  { %467 = vmatpush3.msra.mxu1 %v178_v34 }
  0x1a   :  { %468 = vmatprep.subr.mxu1 %v533_v8 }
  0x1b   :  { %469 = vmatpush3.msra.mxu1 %v177_v35 }
  0x1c   :  { %470 = vmatprep.subr.mxu1 %v533_v8 }
  0x1d   :  { %471 = vmatpush3.msra.mxu1 %v176_v36 }
  0x1e   :  { %472 = vmatprep.subr.mxu1 %v533_v8 }
  0x1f   :  { %473 = vmatpush3.msra.mxu1 %v175_v37 }
  0x20   :  { %474 = vmatprep.subr.mxu1 %v533_v8 }
  0x21   :  { %475 = vmatpush3.msra.mxu1 %v174_v38 }
  0x22   :  { %476 = vmatprep.subr.mxu1 %v533_v8 }
  0x23   :  { %477 = vmatpush3.msra.mxu1 %v173_v39 }
  0x24   :  { %478 = vmatprep.subr.mxu1 %v533_v8 }
  0x25   :  { %479 = vmatpush3.msra.mxu1 %v172_v40 }
  0x8c   :  { %v50_v2 = vpop.xlane.xlu0 %49 }
  0x8d   :  { %v52_v3 = vmul.f32 0.03125, %v50_v2  ;;  %v296_v2 = vld [vmem:[%s756_s9 + $0x10] sm:$0xff] }
  0x8f   :  { %v53_v4 = vsub.f32 %v46_v0, %v52_v3  ;;  %v298_v0 = vld [vmem:[%s756_s9 + $0x20] sm:$0xff]  ;;  %v295_v3 = vld [vmem:[%s756_s9 + $0x8] sm:$0xff] }
  0x91   :  { %v54_v5 = vmul.f32 %v53_v4, %v53_v4 }
  0x93   :  { %v55_v6 = vsel %vm47_vm0, %v54_v5, 0.0 }
  0x94   :  { %56 = vadd.xlane.f32.xlu0 %v55_v6 }
 0x11d   :  { %v57_v12 = vpop.xlane.xlu0 %56 }
 0x11e   :  { %v58_v13 = vmul.f32 0.03125, %v57_v12  ;;  %v403_v12 = vld [vmem:[%s755_s8] ss:$0 sm:$0xff] }
 0x120   :  { %v59_v14 = vadd.f32 1e-05, %v58_v13 }
 0x122   :  { %505 = vrsqrt.f32 %v59_v14 }
 0x12f   :  { %v506_v15 = vpop.eup %505 }
 0x130   :  { %v61_v16 = vmul.f32 %v506_v15, %v53_v4  ;;  %v294_v4 = vld [vmem:[%s756_s9] sm:$0xff] }
 0x132   :  { %446 = vmatmul.mubr.msk.f32.vlgmr.msra.gmra.mxu0 %vm47_vm0, %v61_v16 }
 0x133   :  { %499 = vmatprep.mubr.msk.f32.mxu0 %vm534_vm1, %v533_v8  ;;  %484 = vmatpush3.msra.mxu0 %v301_v61 }
 0x134   :  { %485 = vmatprep.subr.mxu0 %v533_v8 }
 0x135   :  { %486 = vmatpush3.msra.mxu0 %v300_v62 }
 0x136   :  { %487 = vmatprep.subr.mxu0 %v533_v8 }
 0x137   :  { %488 = vmatpush3.msra.mxu0 %v299_v63 }
 0x138   :  { %489 = vmatprep.subr.mxu0 %v533_v8 }
 0x139   :  { %490 = vmatpush3.msra.mxu0 %v298_v0 }
 0x13a   :  { %491 = vmatprep.subr.mxu0 %v533_v8 }
 0x13b   :  { %492 = vmatpush3.msra.mxu0 %v297_v1 }
 0x13c   :  { %493 = vmatprep.subr.mxu0 %v533_v8 }
 0x13d   :  { %494 = vmatpush3.msra.mxu0 %v296_v2 }
 0x13e   :  { %495 = vmatprep.subr.mxu0 %v533_v8 }
 0x13f   :  { %496 = vmatpush3.msra.mxu0 %v295_v3 }
 0x140   :  { %497 = vmatprep.subr.mxu0 %v533_v8  ;;  %v404_v8 = vld [vmem:[%s757_s10] ss:$0 sm:$0xff] }
 0x141   :  { %498 = vmatpush3.msra.mxu0 %v294_v4 }
 0x1f2   :  { %v141_v18 = vpop.f32.mrf.mxu0 }
 0x1f3   :  { %v142_v19 = vadd.f32 %v397_v17, %v141_v18 }
 0x1f4   :  { %v447_v20 = vpop.f32.mrf.mxu0 }
 0x1f5   :  { %145 = vadd.xlane.f32.xlu1 %v142_v19 }
 0x27e   :  { %v146_v24 = vpop.xlane.xlu1 %145 }
 0x27f   :  { %v148_v25 = vmul.f32 0.0078125, %v146_v24 }
 0x281   :  { %v149_v26 = vsub.f32 %v142_v19, %v148_v25 }
 0x283   :  { %v150_v27 = vmul.f32 %v149_v26, %v149_v26 }
 0x285   :  { %151 = vadd.xlane.f32.xlu1 %v150_v27 }
 0x30e   :  { %v152_v41 = vpop.xlane.xlu1 %151 }
 0x30f   :  { %v153_v42 = vmul.f32 0.0078125, %v152_v41 }
 0x311   :  { %v154_v43 = vadd.f32 1e-05, %v153_v42 }
 0x313   :  { %507 = vrsqrt.f32 %v154_v43 }
 0x320   :  { %v508_v44 = vpop.eup %507 }
 0x321   :  { %v156_v46 = vmul.f32 %v508_v44, %v149_v26 }
 0x323   :  { %v163_v48 = vmul.f32 %v399_v45, %v156_v46 }
 0x325   :  { %v170_v49 = vadd.f32 %v400_v47, %v163_v48 }
 0x327   :  { %v171_v50 = vmax.f32 %v170_v49, 0.0 }
 0x329   :  { %481 = vmatmul.mubr.f32.vlgmr.msra.gmra.mxu1 %v171_v50 }
 0x3e9   :  { %v260_v52 = vpop.f32.mrf.mxu1 }
 0x3ea   :  { %v261_v53 = vadd.f32 %v401_v51, %v260_v52 }
 0x3eb   :  { %v482_v54 = vpop.f32.mrf.mxu1 }
 0x3ec   :  { %v265_v55 = vsel %vm264_vm2, %v261_v53, 0.0 }
 0x3ed   :  { %266 = vadd.xlane.f32.xlu0 %v265_v55 }
 0x476   :  { %v267_v56 = vpop.xlane.xlu0 %266 }
 0x477   :  { %v269_v57 = vmul.f32 0.015625, %v267_v56 }
 0x479   :  { %v270_v58 = vsub.f32 %v261_v53, %v269_v57 }
 0x47b   :  { %v271_v59 = vmul.f32 %v270_v58, %v270_v58 }
 0x47d   :  { %v272_v60 = vsel %vm264_vm2, %v271_v59, 0.0 }
 0x47e   :  { %273 = vadd.xlane.f32.xlu1 %v272_v60 }
 0x507   :  { %v274_v5 = vpop.xlane.xlu1 %273 }
 0x508   :  { %v275_v6 = vmul.f32 0.015625, %v274_v5 }
 0x50a   :  { %v276_v7 = vadd.f32 1e-05, %v275_v6 }
 0x50c   :  { %509 = vrsqrt.f32 %v276_v7 }
 0x519   :  { %v510_v9 = vpop.eup %509 }
 0x51a   :  { %v278_v11 = vmul.f32 %v510_v9, %v270_v58 }
 0x51c   :  { %v285_v13 = vmul.f32 %v402_v10, %v278_v11 }
 0x51e   :  { %v292_v14 = vadd.f32 %v403_v12, %v285_v13 }
 0x520   :  { %v293_v15 = vmax.f32 %v292_v14, 0.0 }
 0x522   :  { %500 = vmatmul.mubr.msk.f32.vlgmr.msra.gmra.mxu0 %vm264_vm2, %v293_v15 }
 0x5e2   :  { %v377_v16 = vpop.f32.mrf.mxu0 }
 0x5e3   :  { %v378_v17 = vadd.f32 %v404_v8, %v377_v16 }
 0x5e4   :  { %v501_v18 = vpop.f32.mrf.mxu0 }
 0x5e5   :  { %382 = vst.msk [vmem:[#allocation2] sm:$0xff] %vm381_vm3, %v378_v17 }
 0x5e6   :  { %522 = shalt.err (!%p519_p4)
}
 0x5e7   :  { %392 = dma.vmem_to_hbm [thread:$0]  %s390_s19, 128, %s758_s11, [#allocation3]  }
 0x5e8   :  { %531 = dma.done.wait [#allocation3], 128  }
 0x5e9   :  { %532 = vsyncadd [#allocation3], 4294967168 }
 0x5ea   :  { %396 = vsyncpa [#allocation3], 1 }

</bundles_post_ra>
